<compile_context>
chip_gen: v7x
topology: tpu7x:2x2x1
jax: 0.10.0
libtpu: 0.0.40
codegen_flags: <defaults>
</compile_context>

<pallas_src>
import numpy as np
import jax
import jax.numpy as jnp
from jax.experimental import pallas as pl
from jax.experimental.pallas import tpu as pltpu

TWO_PI = 2.0 * np.pi


# ---------------------------------- Pallas kernel ------------------------------------
def _gfp_kernel(x_ref, w_ref, o_ref):
    e = w_ref.shape[1]                      # embedding_size (static at trace time)
    xs = x_ref[...] * TWO_PI                # (TB, 1)  f32 — scale the 1-vreg operand
    xp = xs * w_ref[...]                    # (TB, E)  broadcast outer product (VPU)
    # Static, 128-aligned half slices -> unmasked vector stores, no concat/shuffle.
    o_ref[:, :e] = jnp.sin(xp).astype(o_ref.dtype)
    o_ref[:, e:] = jnp.cos(xp).astype(o_ref.dtype)


# ---------------------------------- wrapper ------------------------------------------
def gaussian_fourier_projection(x, W, *, out_dtype=jnp.float32, block_b=512):
    """x: (B,) noise levels; W: (E,) fixed Gaussian frequencies. Returns (B, 2E)."""
    b = x.shape[0]
    e = W.shape[0]

    # Batch tile: multiple of 8 rows (unmasked stores), capped at block_b.
    tb = min(block_b, ((b + 7) // 8) * 8)
    tb = max(8, ((tb + 7) // 8) * 8)
    b_pad = ((b + tb - 1) // tb) * tb

    x2 = x.astype(jnp.float32).reshape(b, 1)         # batch on sublanes
    if b_pad != b:
        x2 = jnp.pad(x2, ((0, b_pad - b), (0, 0)))
    w2 = W.astype(jnp.float32).reshape(1, e)          # embedding on lanes

    out_itemsize = jnp.dtype(out_dtype).itemsize
    cost = pl.CostEstimate(
        flops=2 * b_pad * e,                           # 2*pi scale + outer-product mul
        transcendentals=2 * b_pad * e,                 # sin + cos
        bytes_accessed=b_pad * 4 + e * 4 + b_pad * 2 * e * out_itemsize,
    )

    out = pl.pallas_call(
        _gfp_kernel,
        out_shape=jax.ShapeDtypeStruct((b_pad, 2 * e), out_dtype),
        grid=(b_pad // tb,),
        in_specs=[
            pl.BlockSpec((tb, 1), lambda i: (i, 0)),   # per-tile noise levels
            pl.BlockSpec((1, e), lambda i: (0, 0)),    # W resident across the grid
        ],
        out_specs=pl.BlockSpec((tb, 2 * e), lambda i: (i, 0)),
        compiler_params=pltpu.CompilerParams(
            dimension_semantics=("parallel",),         # shard batch across v7x's 2 TCs
        ),
        cost_estimate=cost,
    )(x2, w2)

    if b_pad != b:
        out = out[:b]
    return out


# --------------------------- pure-JAX reference (for checking) -----------------------
def gfp_reference(x, W):
    x_proj = x[:, None] * W[None, :] * TWO_PI
    return jnp.concatenate([jnp.sin(x_proj), jnp.cos(x_proj)], axis=-1)


if __name__ == "__main__":
    E = 256                                            # module default embedding_size
    key = jax.random.PRNGKey(0)
    kx, kw, kx2 = jax.random.split(key, 3)

    # -- small, module-consistent case: B=8 noise levels ------------------------------
    B = 8
    x = jax.random.uniform(kx, (B,), jnp.float32, minval=0.01, maxval=1.0)
    for scale in (1.0, 16.0):
        W = jax.random.normal(kw, (E,), jnp.float32) * scale
        out = jax.block_until_ready(gaussian_fourier_projection(x, W))
        ref = jax.block_until_ready(gfp_reference(x, W))
        assert out.shape == (B, 2 * E) and out.dtype == jnp.float32
        np.testing.assert_allclose(np.asarray(out), np.asarray(ref), rtol=1e-4, atol=1e-4)

    # -- exercise batch tiling + padding (non-multiple of tile) + bf16 output ---------
    B2 = 100
    x2 = jax.random.uniform(kx2, (B2,), jnp.float32, minval=0.01, maxval=1.0)
    W = jax.random.normal(kw, (E,), jnp.float32)
    out_f32 = jax.block_until_ready(gaussian_fourier_projection(x2, W, block_b=32))
    ref2 = jax.block_until_ready(gfp_reference(x2, W))
    assert out_f32.shape == (B2, 2 * E)
    np.testing.assert_allclose(np.asarray(out_f32), np.asarray(ref2), rtol=1e-4, atol=1e-4)

    out_bf16 = jax.block_until_ready(
        gaussian_fourier_projection(x2, W, out_dtype=jnp.bfloat16, block_b=32))
    assert out_bf16.dtype == jnp.bfloat16
    np.testing.assert_allclose(np.asarray(out_bf16, dtype=np.float32),
                               np.asarray(ref2), rtol=2e-2, atol=2e-2)

    print("KERNEL_OK")
</pallas_src>

<mosaic_0001>
module attributes {stable_mosaic.version = 11 : i64} {
  func.func @_gfp_kernel(%arg0: i32, %arg1: memref<8x1xf32, #tpu.memory_space<vmem>>, %arg2: memref<1x256xf32, #tpu.memory_space<vmem>>, %arg3: memref<8x512xf32, #tpu.memory_space<vmem>>) attributes {dimension_semantics = [#tpu.dimension_semantics<parallel>], iteration_bounds = array<i64: 1>, scalar_prefetch = 0 : i64, scratch_operands = 0 : i64, tpu.core_type = #tpu.core_type<tc>, window_params = [{transform_indices = @transform_0, window_bounds = array<i64: 8, 1>}, {pipeline_mode = #tpu.pipeline_mode<synchronous>, transform_indices = @transform_1, window_bounds = array<i64: 1, 256>}, {transform_indices = @transform_2, window_bounds = array<i64: 8, 512>}]} {
    %c0 = arith.constant 0 : index
    %c0_0 = arith.constant 0 : index
    %0 = vector.load %arg1[%c0, %c0_0] : memref<8x1xf32, #tpu.memory_space<vmem>>, vector<8x1xf32>
    %cst = arith.constant 6.28318548 : f32
    %1 = vector.broadcast %cst : f32 to vector<8x1xf32>
    %2 = arith.mulf %0, %1 : vector<8x1xf32>
    %c0_1 = arith.constant 0 : index
    %c0_2 = arith.constant 0 : index
    %3 = vector.load %arg2[%c0_1, %c0_2] : memref<1x256xf32, #tpu.memory_space<vmem>>, vector<1x256xf32>
    %4 = vector.broadcast %2 : vector<8x1xf32> to vector<8x256xf32>
    %5 = vector.broadcast %3 : vector<1x256xf32> to vector<8x256xf32>
    %6 = arith.mulf %4, %5 : vector<8x256xf32>
    %7 = math.sin %6 : vector<8x256xf32>
    %c0_3 = arith.constant 0 : index
    %c0_4 = arith.constant 0 : index
    %8 = vector.load %arg3[%c0_3, %c0_4] : memref<8x512xf32, #tpu.memory_space<vmem>>, vector<8x256xf32>
    tpu.vector_store %arg3[%c0_3, %c0_4], %7 {strides = array<i32>} : memref<8x512xf32, #tpu.memory_space<vmem>>, vector<8x256xf32>,
    %9 = math.cos %6 : vector<8x256xf32>
    %c0_5 = arith.constant 0 : index
    %c256 = arith.constant 256 : index
    %10 = vector.load %arg3[%c0_5, %c256] : memref<8x512xf32, #tpu.memory_space<vmem>>, vector<8x256xf32>
    tpu.vector_store %arg3[%c0_5, %c256], %9 {strides = array<i32>} : memref<8x512xf32, #tpu.memory_space<vmem>>, vector<8x256xf32>,
    return
  }
  func.func @transform_0(%arg0: i32) -> (i32, i32) {
    %c0_i32 = arith.constant 0 : i32
    %c0_i32_0 = arith.constant 0 : i32
    return %arg0, %c0_i32 : i32, i32
  }
  func.func @transform_1(%arg0: i32) -> (i32, i32) {
    %c0_i32 = arith.constant 0 : i32
    %c0_i32_0 = arith.constant 0 : i32
    %c0_i32_1 = arith.constant 0 : i32
    return %c0_i32, %c0_i32_0 : i32, i32
  }
  func.func @transform_2(%arg0: i32) -> (i32, i32) {
    %c0_i32 = arith.constant 0 : i32
    %c0_i32_0 = arith.constant 0 : i32
    return %arg0, %c0_i32 : i32, i32
  }
}

</mosaic_0001>

<bundles_post_ra>
// kernel: tpu_custom_call.1
= control target key start
LH: loop header
LB: loop body
LE: loop exit
PB: predicated region body
PF: predicated region fallthrough
CT: control target
= control target key end

     0   :  { %v530_v1 = vmov 0   ;;  %s633_s0 = inlined_call_operand.vmem [shape: f32[8,1], index: 0, kind: input, shape index: {}]   ;;  %s634_s1 = inlined_call_operand.vmem [shape: f32[1,256], index: 1, kind: input, shape index: {}]   ;;  %s635_s2 = inlined_call_operand.hbm [shape: f32[8,512], index: 2, kind: output, shape index: {}]  }
   0x1   :  { %v12_v0 = vld [vmem:[%s633_s0] sm:$0xff]  ;;  %497 = vset.pattern.permute.xlu0 %v530_v1 }
   0x2   :  { %v13_v2 = vmul.f32 6.2831855, %v12_v0 }
   0x4   :  { %17 = vperm.xlu0 %497, %v13_v2  }
   0x5   :  { %7 = vsyncpa [#allocation3], 0  ;;  %v21_v3 = vlaneseq  ;;  %v14_v7 = vld [vmem:[%s634_s1] sm:$0x3]  ;;  %v531_v33 = vmov 683565275  }
   0x6   :  { %v532_v37 = vmov 2475754826   ;;  %v533_v39 = vmov 2131351028   ;;  %v534_v41 = vmov 2102212464  }
   0x7   :  { %v22_v4 = vshrl.u32 %v21_v3, 7  ;;  %v535_v43 = vmov 920167782   ;;  %v536_v50 = vmov 1326507024   ;;  %s537_s0 = smov [#allocation2]  }
   0x8   :  { %s457_s1 = sshll.u32 %s537_s0, 4  ;;  %s458_s1 = int_to_ptr.vmem [resolvable:$true] %s457_s1 }
   0x9   :  { %v23_v5 = vsub.s32 0, %v22_v4  ;;  %v27_v6 = vsub.s32 1, %v22_v4  ;;  %s506_s13 = scalar_lea.vmem %s458_s1, 512  ;;  %p511_p1 = scmp.lt.s32.totalorder %s458_s1, %s458_s1 }
   0xa   :  { %p507_p0 = scmp.ne.s32.totalorder %s458_s1, %s506_s13  ;;  %p512_p2 = scmp.lt.s32.totalorder %s506_s13, %s506_s13 }
   0xb   :  { %v24_v8 = vrot.slane %v14_v7, %v23_v5  ;;  %v28_v9 = vrot.slane %v14_v7, %v27_v6 }
   0xc   :  { %p513_p3 = por %p512_p2, %p511_p1 }
   0xe   :  { %p514_p4 = pnand %p513_p3, %p507_p0 }
  0x83   :  { %v18_v10 = vpop.permute.xlu0 %17 }
  0x84   :  { %v559_v11 = vmul.f32 %v24_v8, %v18_v10  ;;  %v561_v12 = vmul.f32 %v28_v9, %v18_v10 }
  0x86   :  { %v33_v13 = vand.u32 2147483647, %v559_v11  ;;  %v36_v14 = vand.u32 2139095040, %v559_v11  ;;  %v140_v15 = vand.u32 2139095040, %v561_v12  ;;  %v137_v18 = vand.u32 2147483647, %v561_v12 }
  0x87   :  { %vm35_vm14 = vcmp.lt.s32.totalorder %v559_v11, 0 }
  0x88   :  { %v37_v16 = vshrl.u32 %v36_v14, 23  ;;  %v40_v17 = vand.u32 8388607, %v33_v13  ;;  %v141_v19 = vshrl.u32 %v140_v15, 23  ;;  %v571_v24 = vand.u32 8388607, %v137_v18 }
  0x89   :  { %vm34_vm15 = vcmp.le.f32.partialorder %v33_v13, 0.7853982 }
  0x8a   :  { %v465_v20 = vadd.s32 4294967169, %v37_v16  ;;  %v469_v21 = vadd.s32 4294967169, %v141_v19  ;;  %v41_v23 = vor.u32 8388608, %v40_v17  ;;  %v145_v31 = vor.u32 8388608, %v571_v24 }
  0x8c   :  { %v43_v22 = vadd.s32 1, %v465_v20  ;;  %v147_v25 = vadd.s32 1, %v469_v21  ;;  %v573_v30 = vshll.u32 %v41_v23, 8 }
  0x8e   :  { %vm44_vm0 = vcmp.gt.s32.totalorder %v43_v22, 0  ;;  %vm148_vm1 = vcmp.gt.s32.totalorder %v147_v25, 0 }
  0x8f   :  { %v45_v26 = vsel %vm44_vm0, %v43_v22, 0  ;;  %v149_v29 = vsel %vm148_vm1, %v147_v25, 0  ;;  %v185_v25 = vshll.u32 %v145_v31, 8  ;;  %vm139_vm0 = vcmp.lt.s32.totalorder %v561_v12, 0 }
  0x90   :  { %v46_v27 = vshrl.u32 %v45_v26, 5  ;;  %v47_v28 = vand.u32 31, %v45_v26  ;;  %v576_v35 = vshrl.u32 %v149_v29, 5  ;;  %v151_v36 = vand.u32 31, %v149_v29 }
  0x91   :  { %vm138_vm1 = vcmp.le.f32.partialorder %v137_v18, 0.7853982 }
  0x92   :  { %v48_v32 = vsub.s32 32, %v47_v28  ;;  %v50_v34 = vshll.u32 %v531_v33, %v47_v28  ;;  %v53_v38 = vshll.u32 %v532_v37, %v47_v28  ;;  %v56_v40 = vshll.u32 %v533_v39, %v47_v28 }
  0x93   :  { %v59_v42 = vshll.u32 %v534_v41, %v47_v28  ;;  %v62_v44 = vshll.u32 %v535_v43, %v47_v28  ;;  %vm65_vm2 = vcmp.lt.s32.totalorder %v46_v27, 1  ;;  %vm66_vm3 = vcmp.lt.s32.totalorder %v46_v27, 2 }
  0x94   :  { %v51_v45 = vshrl.u32 %v532_v37, %v48_v32  ;;  %v54_v46 = vshrl.u32 %v533_v39, %v48_v32  ;;  %v57_v47 = vshrl.u32 %v534_v41, %v48_v32  ;;  %v49_v48 = vshrl.u32 %v531_v33, %v48_v32 }
  0x95   :  { %v60_v49 = vshrl.u32 %v535_v43, %v48_v32  ;;  %v63_v51 = vshrl.u32 %v536_v50, %v48_v32  ;;  %v152_v55 = vsub.s32 32, %v151_v36  ;;  %vm67_vm4 = vcmp.lt.s32.totalorder %v46_v27, 3 }
  0x96   :  { %v52_v52 = vor.u32 %v51_v45, %v50_v34  ;;  %v55_v53 = vor.u32 %v54_v46, %v53_v38  ;;  %v58_v54 = vor.u32 %v57_v47, %v56_v40  ;;  %vm68_vm5 = vcmp.lt.s32.totalorder %v46_v27, 4 }
  0x97   :  { %v61_v56 = vor.u32 %v60_v49, %v59_v42  ;;  %v64_v57 = vor.u32 %v63_v51, %v62_v44  ;;  %v154_v1 = vshll.u32 %v531_v33, %v151_v36  ;;  %v155_v4 = vshrl.u32 %v532_v37, %v152_v55 }
  0x98   :  { %v69_v58 = vsel %vm65_vm2, %v49_v48, %v52_v52  ;;  %v70_v59 = vsel %vm68_vm5, %v58_v54, 2102212464  ;;  %v73_v60 = vsel %vm65_vm2, %v52_v52, %v55_v53  ;;  %v77_v61 = vsel %vm65_vm2, %v55_v53, %v58_v54 }
  0x99   :  { %v71_v62 = vsel %vm67_vm4, %v55_v53, %v70_v59  ;;  %v74_v63 = vsel %vm68_vm5, %v61_v56, 920167782  ;;  %v78_v0 = vsel %vm68_vm5, %v64_v57, 1326507024  ;;  %v157_v5 = vshll.u32 %v532_v37, %v151_v36 }
  0x9a   :  { %v75_v2 = vsel %vm67_vm4, %v58_v54, %v74_v63  ;;  %v79_v3 = vsel %vm67_vm4, %v61_v56, %v78_v0  ;;  %v72_v6 = vsel %vm66_vm3, %v69_v58, %v71_v62  ;;  %v158_v9 = vshrl.u32 %v533_v39, %v152_v55 }
  0x9b   :  { %v76_v7 = vsel %vm66_vm3, %v73_v60, %v75_v2  ;;  %v80_v8 = vsel %vm66_vm3, %v77_v61, %v79_v3  ;;  %v156_v17 = vor.u32 %v155_v4, %v154_v1  ;;  %v160_v20 = vshll.u32 %v533_v39, %v151_v36 }
  0x9c   :  { %v585_v10 = vmul.u32.u64.low %v573_v30, %v80_v8  ;;  %v586_v14 = vmul.u32.u64.high %v573_v30, %v80_v8, %v585_v10  ;;  %v589_v15 = vmul.u32.u64.low %v573_v30, %v76_v7  ;;  %v590_v16 = vmul.u32.u64.high %v573_v30, %v76_v7, %v589_v15 }
  0x9d   :  { %v159_v19 = vor.u32 %v158_v9, %v157_v5  ;;  %v161_v21 = vshrl.u32 %v534_v41, %v152_v55  ;;  %v163_v22 = vshll.u32 %v534_v41, %v151_v36  ;;  %v164_v23 = vshrl.u32 %v535_v43, %v152_v55 }
  0x9e   :  { %v167_v24 = vshrl.u32 %v536_v50, %v152_v55  ;;  %v88_v26 = vmul.u32 %v573_v30, %v72_v6  ;;  %v153_v27 = vshrl.u32 %v531_v33, %v152_v55  ;;  %v166_v29 = vshll.u32 %v535_v43, %v151_v36 }
  0x9f   :  { %v162_v28 = vor.u32 %v161_v21, %v160_v20  ;;  %vm90_vm6 = vc.u32 %v586_v14, %v589_v15  ;;  %v91_v32 = vadd.s32 1, %v590_v16  ;;  %v165_v34 = vor.u32 %v164_v23, %v163_v22 }
  0xa0   :  { %vm169_vm7 = vcmp.lt.s32.totalorder %v576_v35, 1  ;;  %v168_v37 = vor.u32 %v167_v24, %v166_v29  ;;  %vm171_vm8 = vcmp.lt.s32.totalorder %v576_v35, 3  ;;  %vm172_vm9 = vcmp.lt.s32.totalorder %v576_v35, 4 }
  0xa1   :  { %v177_v38 = vsel %vm169_vm7, %v156_v17, %v159_v19  ;;  %v92_v31 = vsel %vm90_vm6, %v91_v32, %v590_v16  ;;  %v174_v39 = vsel %vm172_vm9, %v162_v28, 2102212464  ;;  %v178_v30 = vsel %vm172_vm9, %v165_v34, 920167782 }
  0xa2   :  { %v181_v33 = vsel %vm169_vm7, %v159_v19, %v162_v28  ;;  %v93_v40 = vadd.s32 %v92_v31, %v88_v26  ;;  %vm170_vm10 = vcmp.lt.s32.totalorder %v576_v35, 2  ;;  %v179_v36 = vsel %vm171_vm8, %v162_v28, %v178_v30 }
  0xa3   :  { %v182_v41 = vsel %vm172_vm9, %v168_v37, 1326507024  ;;  %v173_v42 = vsel %vm169_vm7, %v153_v27, %v156_v17  ;;  %v175_v43 = vsel %vm171_vm8, %v159_v19, %v174_v39  ;;  %v180_v44 = vsel %vm170_vm10, %v177_v38, %v179_v36 }
  0xa4   :  { %v183_v45 = vsel %vm171_vm8, %v165_v34, %v182_v41  ;;  %v94_v46 = vadd.s32 536870912, %v93_v40  ;;  %v600_v48 = vmul.u32.u64.low %v185_v25, %v180_v44  ;;  %v601_v49 = vmul.u32.u64.high %v185_v25, %v180_v44, %v600_v48 }
  0xa5   :  { %v184_v47 = vsel %vm170_vm10, %v181_v33, %v183_v45  ;;  %v176_v53 = vsel %vm170_vm10, %v173_v42, %v175_v43  ;;  %v89_v5 = vadd.s32 %v589_v15, %v586_v14  ;;  %vm125_vm8 = vweird.f32 %v559_v11 }
  0xa6   :  { %v603_v50 = vmul.u32.u64.low %v185_v25, %v184_v47  ;;  %v604_v51 = vmul.u32.u64.high %v185_v25, %v184_v47, %v603_v50  ;;  %v95_v52 = vshrl.u32 %v94_v46, 30  ;;  %v195_v55 = vadd.s32 1, %v601_v49 }
  0xa7   :  { %v192_v35 = vmul.u32 %v185_v25, %v176_v53 }
  0xa8   :  { %v96_v54 = vshll.u32 %v95_v52, 30  ;;  %vm194_vm11 = vc.u32 %v604_v51, %v600_v48  ;;  %v193_v26 = vadd.s32 %v600_v48, %v604_v51  ;;  %v119_v15 = vsub.s32 4, %v95_v52 }
  0xa9   :  { %v196_v57 = vsel %vm194_vm11, %v195_v55, %v601_v49 }
  0xaa   :  { %v97_v56 = vsub.s32 %v93_v40, %v96_v54  ;;  %v197_v58 = vadd.s32 %v196_v57, %v192_v35  ;;  %v120_v30 = vsel %vm35_vm14, %v119_v15, %v95_v52 }
  0xab   :  { %v122_v36 = vsel %vm34_vm15, 0, %v120_v30 }
  0xac   :  { %v99_v59 = vsub.s32 0, %v97_v56  ;;  %v198_v60 = vadd.s32 536870912, %v197_v58  ;;  %v126_v45 = vadd.s32 3, %v122_v36  ;;  %v336_v50 = vand.u32 3, %v122_v36 }
  0xae   :  { %v466_v61 = vmin.u32 %v99_v59, %v97_v56  ;;  %v199_v62 = vshrl.u32 %v198_v60, 30  ;;  %v127_v49 = vand.u32 3, %v126_v45  ;;  %vm338_vm3 = vcmp.eq.s32.totalorder %v336_v50, 0 }
  0xaf   :  { %vm341_vm4 = vcmp.eq.s32.totalorder %v336_v50, 2  ;;  %vm337_vm7 = vcmp.lt.s32.totalorder %v336_v50, 2 }
  0xb0   :  { %v101_v63 = vclz %v466_v61  ;;  %v200_v0 = vshll.u32 %v199_v62, 30  ;;  %v223_v44 = vsub.s32 4, %v199_v62  ;;  %vm132_vm2 = vcmp.eq.s32.totalorder %v127_v49, 2 }
  0xb1   :  { %vm129_vm5 = vcmp.eq.s32.totalorder %v127_v49, 0  ;;  %vm128_vm6 = vcmp.lt.s32.totalorder %v127_v49, 2 }
  0xb2   :  { %v467_v1 = vadd.s32 4294967294, %v101_v63  ;;  %v201_v2 = vsub.s32 %v197_v58, %v200_v0  ;;  %v224_v47 = vsel %vm139_vm0, %v223_v44, %v199_v62 }
  0xb3   :  { %v226_v52 = vsel %vm138_vm1, 0, %v224_v47 }
  0xb4   :  { %vm468_vm12 = vcmp.lt.s32.totalorder %v467_v1, 0  ;;  %v203_v4 = vsub.s32 0, %v201_v2  ;;  %v439_v0 = vand.u32 3, %v226_v52 }
  0xb5   :  { %v104_v3 = vsel %vm468_vm12, 0, %v467_v1 }
  0xb6   :  { %v105_v6 = vsub.s32 32, %v104_v3  ;;  %v109_v7 = vsub.s32 4294967266, %v104_v3  ;;  %v470_v8 = vmin.u32 %v203_v4, %v201_v2  ;;  %v106_v9 = vshll.u32 %v97_v56, %v104_v3 }
  0xb7   :  { %v230_v56 = vadd.s32 3, %v226_v52  ;;  %vm444_vm10 = vcmp.eq.s32.totalorder %v439_v0, 2  ;;  %vm441_vm12 = vcmp.eq.s32.totalorder %v439_v0, 0 }
  0xb8   :  { %v107_v10 = vshrl.u32 %v89_v5, %v105_v6  ;;  %v110_v16 = vadd.s32 127, %v109_v7  ;;  %v205_v17 = vclz %v470_v8 }
  0xb9   :  { %v231_v63 = vand.u32 3, %v230_v56 }
  0xba   :  { %v108_v19 = vor.u32 %v107_v10, %v106_v9  ;;  %v111_v20 = vshll.u32 %v110_v16, 23  ;;  %v471_v21 = vadd.s32 4294967294, %v205_v17 }
  0xbb   :  { %vm236_vm9 = vcmp.eq.s32.totalorder %v231_v63, 2  ;;  %vm233_vm11 = vcmp.eq.s32.totalorder %v231_v63, 0 }
  0xbc   :  { %v112_v22 = vor.u32 4788187, %v111_v20  ;;  %vm472_vm13 = vcmp.lt.s32.totalorder %v471_v21, 0  ;;  %v115_v24 = vcvt.s32.f32 %v108_v19 }
  0xbd   :  { %v208_v25 = vsel %vm472_vm13, 0, %v471_v21  ;;  %vm232_vm13 = vcmp.lt.s32.totalorder %v231_v63, 2 }
  0xbe   :  { %v113_v23 = vand.u32 2147483647, %v112_v22  ;;  %v209_v27 = vsub.s32 32, %v208_v25  ;;  %v213_v28 = vsub.s32 4294967266, %v208_v25  ;;  %v210_v29 = vshll.u32 %v201_v2, %v208_v25 }
  0xc0   :  { %v116_v14 = vmul.f32 %v115_v24, %v113_v23  ;;  %v211_v32 = vshrl.u32 %v193_v26, %v209_v27  ;;  %v214_v34 = vadd.s32 127, %v213_v28 }
  0xc2   :  { %v117_v37 = vxor.u32 2147483648, %v116_v14  ;;  %v212_v38 = vor.u32 %v211_v32, %v210_v29  ;;  %v215_v31 = vshll.u32 %v214_v34, 23 }
  0xc4   :  { %v118_v39 = vsel %vm35_vm14, %v117_v37, %v116_v14  ;;  %v216_v40 = vor.u32 4788187, %v215_v31  ;;  %v219_v42 = vcvt.s32.f32 %v212_v38  ;;  %vm440_vm14 = vcmp.lt.s32.totalorder %v439_v0, 2 }
  0xc5   :  { %v121_v33 = vsel %vm34_vm15, %v559_v11, %v118_v39  ;;  %vm229_vm15 = vweird.f32 %v561_v12 }
  0xc6   :  { %498 = vcosq.f32 %v121_v33  ;;  %v217_v41 = vand.u32 2147483647, %v216_v40 }
  0xc7   :  { %500 = vsinq.f32 %v121_v33 }
  0xc8   :  { %v220_v43 = vmul.f32 %v219_v42, %v217_v41 }
  0xca   :  { %v221_v46 = vxor.u32 2147483648, %v220_v43 }
  0xcc   :  { %v222_v13 = vsel %vm139_vm0, %v221_v46, %v220_v43 }
  0xcd   :  { %v225_v48 = vsel %vm138_vm1, %v561_v12, %v222_v13 }
  0xce   :  { %502 = vcosq.f32 %v225_v48 }
  0xcf   :  { %504 = vsinq.f32 %v225_v48 }
  0xd0   :  { %v499_v51 = vpop.eup %498 }
  0xd1   :  { %v501_v53 = vpop.eup %500  ;;  %v133_v54 = vxor.u32 2147483648, %v499_v51 }
  0xd2   :  { %v130_v55 = vxor.u32 2147483648, %v501_v53 }
  0xd3   :  { %v134_v35 = vsel %vm132_vm2, %v133_v54, %v501_v53  ;;  %v343_v18 = vsel %vm341_vm4, %v133_v54, %v501_v53 }
  0xd4   :  { %v131_v57 = vsel %vm129_vm5, %v499_v51, %v130_v55  ;;  %v340_v58 = vsel %vm338_vm3, %v499_v51, %v130_v55 }
  0xd5   :  { %v135_v59 = vsel %vm128_vm6, %v131_v57, %v134_v35  ;;  %v344_v60 = vsel %vm337_vm7, %v340_v58, %v343_v18 }
  0xd6   :  { %v136_v61 = vsel %vm125_vm8, nan, %v135_v59  ;;  %v345_v62 = vsel %vm125_vm8, nan, %v344_v60 }
  0xd7   :  { %241 = vst [vmem:[#allocation2] sm:$0xff] %v136_v61  ;;  %449 = vst [vmem:[#allocation2 + $0x10] sm:$0xff] %v345_v62 }
  0xd8   :  { %v503_v1 = vpop.eup %502 }
  0xd9   :  { %v505_v2 = vpop.eup %504  ;;  %v237_v3 = vxor.u32 2147483648, %v503_v1 }
  0xda   :  { %v234_v4 = vxor.u32 2147483648, %v505_v2 }
  0xdb   :  { %v238_v5 = vsel %vm236_vm9, %v237_v3, %v505_v2  ;;  %v446_v11 = vsel %vm444_vm10, %v237_v3, %v505_v2 }
  0xdc   :  { %v235_v6 = vsel %vm233_vm11, %v503_v1, %v234_v4  ;;  %v443_v7 = vsel %vm441_vm12, %v503_v1, %v234_v4 }
  0xdd   :  { %v239_v8 = vsel %vm232_vm13, %v235_v6, %v238_v5  ;;  %v447_v9 = vsel %vm440_vm14, %v443_v7, %v446_v11 }
  0xde   :  { %v240_v10 = vsel %vm229_vm15, nan, %v239_v8  ;;  %v448_v16 = vsel %vm229_vm15, nan, %v447_v9 }
  0xdf   :  { %242 = vst [vmem:[#allocation2 + $0x8] sm:$0xff] %v240_v10  ;;  %450 = vst [vmem:[#allocation2 + $0x18] sm:$0xff] %v448_v16 }
  0xe0   :  { %517 = shalt.err (!%p514_p4)
}
  0xe1   :  { %s518_s16 = scalar_lea.hbm %s635_s2, 512 }
  0xe2   :  { %p519_p5 = scmp.ne.s32.totalorder %s635_s2, %s518_s16  ;;  %p522_p6 = scmp.lt.u32.totalorder %s518_s16, %s635_s2 }
  0xe4   :  { %p524_p7 = pnand %p522_p6, %p519_p5 }
  0xe6   :  { %527 = shalt.err (!%p524_p7)
}
  0xe7   :  { %460 = dma.vmem_to_hbm [thread:$0]  %s458_s1, 512, %s635_s2, [#allocation3]  }
  0xe8   :  { %528 = dma.done.wait [#allocation3], 512  }
  0xe9   :  { %529 = vsyncadd [#allocation3], 4294966784 }
  0xea   :  { %464 = vsyncpa [#allocation3], 1 }

</bundles_post_ra>
